<compile_context>
chip_gen: v7x
topology: tpu7x:2x2x1
jax: 0.10.0
libtpu: 0.0.40
codegen_flags: <defaults>
</compile_context>

<pallas_src>
import jax
import jax.numpy as jnp
from jax.experimental import pallas as pl
from jax.experimental.pallas import tpu as pltpu


# ---------------------------------------------------------------------------
# Kernel
# ---------------------------------------------------------------------------
def _linear_cast_kernel(x_ref, w_ref, b_ref, o_ref, acc_ref):
    k = pl.program_id(2)

    @pl.when(k == 0)
    def _():
        acc_ref[...] = jnp.zeros_like(acc_ref)

    # bf16 MXU inputs (weight is already cached as bf16), f32 accumulation.
    acc_ref[...] += jnp.dot(
        x_ref[...].astype(jnp.bfloat16),
        w_ref[...],
        preferred_element_type=jnp.float32,
    )

    @pl.when(k == pl.num_programs(2) - 1)
    def _():
        # bias added exactly once, then the ToWeightsDType ".to(dtype)" cast.
        acc = acc_ref[...] + b_ref[...].astype(jnp.float32)
        o_ref[...] = acc.astype(o_ref.dtype)


# ---------------------------------------------------------------------------
# Tiling helpers
# ---------------------------------------------------------------------------
def _round_up(x: int, m: int) -> int:
    return (x + m - 1) // m * m


def _choose_tile(dim: int, max_tile: int, align: int = 128, prefer_multi: bool = True):
    """Pick a tile (multiple of `align`, <= max_tile, clamped to cover `dim`)
    minimising the padded extent.  Among minimal-padding candidates, prefer the
    largest tile that still yields >= 2 tiles (parallel axes / megacore)."""
    hi = max(align, min(max_tile, _round_up(dim, align)))
    cands = [(t, _round_up(dim, t)) for t in range(align, hi + 1, align)]
    min_padded = min(p for _, p in cands)
    best = [t for t, p in cands if p == min_padded]
    if prefer_multi:
        multi = [t for t in best if min_padded // t >= 2]
        if multi:
            return max(multi), min_padded
    return max(best), min_padded


def _choose_tm(B: int, max_tm: int):
    if B <= max_tm:
        tm = _round_up(B, 16)  # bf16 output packs 2 rows/sublane -> 16-row granularity
        return tm, tm
    return _choose_tile(B, max_tm, align=128, prefer_multi=True)


# ---------------------------------------------------------------------------
# Module-like wrapper (weight/bias cached once, like ToWeightsDType(nn.Linear))
# ---------------------------------------------------------------------------
class ToWeightsDTypeLinear:
    """Pallas/JAX port of ToWeightsDType(nn.Linear(In, Out), out_dtype)."""

    def __init__(self, weight, bias, out_dtype=jnp.bfloat16,
                 max_tm=512, max_tn=512, max_tk=1024):
        In, Out = weight.shape
        self.In, self.Out = In, Out
        self.out_dtype = out_dtype
        self.max_tm = max_tm

        self.tn, self.Np = _choose_tile(Out, max_tn, prefer_multi=True)
        self.tk, self.Kp = _choose_tile(In, max_tk, prefer_multi=False)

        # Constant parameters: pad + cast exactly once (not per forward call).
        w = weight
        if (self.Kp, self.Np) != (In, Out):
            w = jnp.pad(w, ((0, self.Kp - In), (0, self.Np - Out)))
        self.wp = jnp.asarray(w, dtype=jnp.bfloat16)

        b = jnp.asarray(bias, dtype=jnp.float32)
        if self.Np != Out:
            b = jnp.pad(b, (0, self.Np - Out))
        self.bp = b.reshape(1, self.Np)

    def __call__(self, x):
        B, In = x.shape
        assert In == self.In, (In, self.In)
        tn, tk, Np, Kp = self.tn, self.tk, self.Np, self.Kp

        tm, Bp = _choose_tm(B, self.max_tm)

        # v7x megacore: make sure at least one "parallel" grid axis has >= 2 tiles.
        if Bp // tm == 1 and Np // tn == 1:
            if tn % 256 == 0:
                tn //= 2
            elif tm % 32 == 0:
                tm //= 2

        n_m, n_n, n_k = Bp // tm, Np // tn, Kp // tk

        # Pre-cast x to bf16 only when the kernel re-reads it across >= 3 N tiles;
        # otherwise stream it as-is and rely on the in-kernel cast (VPU slack).
        xp = x
        if n_n >= 3 and xp.dtype != jnp.bfloat16:
            xp = xp.astype(jnp.bfloat16)
        if (Bp, Kp) != (B, In):               # fast path: skip pad when aligned
            xp = jnp.pad(xp, ((0, Bp - B), (0, Kp - In)))

        x_itemsize = jnp.dtype(xp.dtype).itemsize
        out_itemsize = jnp.dtype(self.out_dtype).itemsize

        cost = pl.CostEstimate(
            flops=2 * Bp * Kp * Np,
            transcendentals=0,
            bytes_accessed=(n_n * Bp * Kp * x_itemsize      # x re-read per N tile
                            + n_m * Kp * Np * 2             # bf16 weight per M tile
                            + self.bp.size * 4
                            + Bp * Np * out_itemsize),
        )

        # Per-step VMEM footprint (double-buffered in/out + f32 accumulator).
        vmem_bytes = (2 * tm * tk * x_itemsize + 2 * tk * tn * 2
                      + 2 * tm * tn * out_itemsize + tm * tn * 4 + 2 * tn * 4)
        compiler_kwargs = dict(
            dimension_semantics=("parallel", "parallel", "arbitrary"))
        if vmem_bytes > (12 << 20):
            # Only oversized user-supplied tile configs ever hit this branch;
            # keep the request within v7x's smaller physical VMEM.
            compiler_kwargs["vmem_limit_bytes"] = min(vmem_bytes + (4 << 20), 48 << 20)

        out = pl.pallas_call(
            _linear_cast_kernel,
            out_shape=jax.ShapeDtypeStruct((Bp, Np), self.out_dtype),
            grid_spec=pltpu.PrefetchScalarGridSpec(
                num_scalar_prefetch=0,
                grid=(n_m, n_n, n_k),
                in_specs=[
                    pl.BlockSpec((tm, tk), lambda i, j, k: (i, k)),
                    pl.BlockSpec((tk, tn), lambda i, j, k: (k, j)),
                    pl.BlockSpec((1, tn), lambda i, j, k: (0, j)),
                ],
                out_specs=pl.BlockSpec((tm, tn), lambda i, j, k: (i, j)),
                scratch_shapes=[pltpu.VMEM((tm, tn), jnp.float32)],
            ),
            compiler_params=pltpu.CompilerParams(**compiler_kwargs),
            cost_estimate=cost,
        )(xp, self.wp, self.bp)

        if (Bp, Np) != (B, self.Out):         # fast path: skip slice when aligned
            out = out[:B, :self.Out]
        return out


def to_weights_dtype_linear(x, weight, bias, out_dtype=jnp.bfloat16):
    """One-off functional form (prefer ToWeightsDTypeLinear to cache the weight)."""
    return ToWeightsDTypeLinear(weight, bias, out_dtype=out_dtype)(x)


# ---------------------------------------------------------------------------
# Self-test
# ---------------------------------------------------------------------------
def _check(key, B, In, Out, atol=5e-2, rtol=5e-2):
    kx, kw, kb = jax.random.split(key, 3)
    x = jax.random.normal(kx, (B, In), dtype=jnp.float32)
    weight = jax.random.normal(kw, (In, Out), dtype=jnp.float32) * (1.0 / jnp.sqrt(In))
    bias = jax.random.normal(kb, (Out,), dtype=jnp.float32) * 0.01

    module = ToWeightsDTypeLinear(weight, bias, out_dtype=jnp.bfloat16)
    out = module(x)
    out = jax.block_until_ready(out)

    ref = (x @ weight + bias).astype(jnp.bfloat16)
    assert out.shape == (B, Out)
    assert out.dtype == jnp.bfloat16
    assert jnp.allclose(out.astype(jnp.float32), ref.astype(jnp.float32),
                        atol=atol, rtol=rtol), "mismatch vs reference"


if __name__ == "__main__":
    key = jax.random.PRNGKey(0)
    k1, k2 = jax.random.split(key)

    # Small shape matching the wrapped nn.Linear demo (single-tile path + padding).
    _check(k1, B=8, In=32, Out=32)

    # Shape exercising the multi-N-tile grid, minimal-padding tn choice (128 for
    # Out=300), cached-weight reuse, and the output slice-back path.
    _check(k2, B=16, In=1024, Out=300)

    print("KERNEL_OK")
</pallas_src>

<mosaic_0001>
module attributes {stable_mosaic.version = 11 : i64} {
  func.func @_linear_cast_kernel(%arg0: i32, %arg1: i32, %arg2: i32, %arg3: memref<16x128xf32, #tpu.memory_space<vmem>>, %arg4: memref<128x128xbf16, #tpu.memory_space<vmem>>, %arg5: memref<1x128xf32, #tpu.memory_space<vmem>>, %arg6: memref<16x128xbf16, #tpu.memory_space<vmem>>, %arg7: memref<16x128xf32, #tpu.memory_space<vmem>>) attributes {dimension_semantics = [#tpu.dimension_semantics<parallel>, #tpu.dimension_semantics<parallel>, #tpu.dimension_semantics<arbitrary>], iteration_bounds = array<i64: 1, 1, 1>, scalar_prefetch = 0 : i64, scratch_operands = 1 : i64, tpu.core_type = #tpu.core_type<tc>, window_params = [{transform_indices = @transform_0, window_bounds = array<i64: 16, 128>}, {transform_indices = @transform_1, window_bounds = array<i64: 128, 128>}, {transform_indices = @transform_2, window_bounds = array<i64: 1, 128>}, {transform_indices = @transform_3, window_bounds = array<i64: 16, 128>}]} {
    %c0_i32 = arith.constant 0 : i32
    %0 = arith.cmpi eq, %arg2, %c0_i32 : i32
    %1 = arith.extui %0 : i1 to i32
    %c0_i32_0 = arith.constant 0 : i32
    %2 = arith.cmpi ne, %1, %c0_i32_0 : i32
    scf.if %2 {
      %cst_10 = arith.constant 0.000000e+00 : f32
      %13 = vector.broadcast %cst_10 : f32 to vector<16x128xf32>
      %c0_11 = arith.constant 0 : index
      %c0_12 = arith.constant 0 : index
      %14 = vector.load %arg7[%c0_11, %c0_12] : memref<16x128xf32, #tpu.memory_space<vmem>>, vector<16x128xf32>
      tpu.vector_store %arg7[%c0_11, %c0_12], %13 {strides = array<i32>} : memref<16x128xf32, #tpu.memory_space<vmem>>, vector<16x128xf32>,
    } else {
    }
    %c0 = arith.constant 0 : index
    %c0_1 = arith.constant 0 : index
    %3 = vector.load %arg7[%c0, %c0_1] : memref<16x128xf32, #tpu.memory_space<vmem>>, vector<16x128xf32>
    %c0_2 = arith.constant 0 : index
    %c0_3 = arith.constant 0 : index
    %4 = vector.load %arg3[%c0_2, %c0_3] : memref<16x128xf32, #tpu.memory_space<vmem>>, vector<16x128xf32>
    %5 = arith.truncf %4 : vector<16x128xf32> to vector<16x128xbf16>
    %c0_4 = arith.constant 0 : index
    %c0_5 = arith.constant 0 : index
    %6 = vector.load %arg4[%c0_4, %c0_5] : memref<128x128xbf16, #tpu.memory_space<vmem>>, vector<128x128xbf16>
    %cst = arith.constant dense<0.000000e+00> : vector<16x128xf32>
    %7 = tpu.matmul %5, %6, %cst {dimension_numbers = #tpu.dot_dimension_numbers<[1], [0], [0], [1], [0, 0, 1, 1], [], []>} : vector<16x128xbf16>, vector<128x128xbf16>, vector<16x128xf32> -> vector<16x128xf32>
    %8 = arith.addf %3, %7 : vector<16x128xf32>
    %c0_6 = arith.constant 0 : index
    %c0_7 = arith.constant 0 : index
    %9 = vector.load %arg7[%c0_6, %c0_7] : memref<16x128xf32, #tpu.memory_space<vmem>>, vector<16x128xf32>
    tpu.vector_store %arg7[%c0_6, %c0_7], %8 {strides = array<i32>} : memref<16x128xf32, #tpu.memory_space<vmem>>, vector<16x128xf32>,
    %c0_i32_8 = arith.constant 0 : i32
    %10 = arith.cmpi eq, %arg2, %c0_i32_8 : i32
    %11 = arith.extui %10 : i1 to i32
    %c0_i32_9 = arith.constant 0 : i32
    %12 = arith.cmpi ne, %11, %c0_i32_9 : i32
    scf.if %12 {
      %c0_10 = arith.constant 0 : index
      %c0_11 = arith.constant 0 : index
      %13 = vector.load %arg7[%c0_10, %c0_11] : memref<16x128xf32, #tpu.memory_space<vmem>>, vector<16x128xf32>
      %c0_12 = arith.constant 0 : index
      %c0_13 = arith.constant 0 : index
      %14 = vector.load %arg5[%c0_12, %c0_13] : memref<1x128xf32, #tpu.memory_space<vmem>>, vector<1x128xf32>
      %15 = vector.broadcast %14 : vector<1x128xf32> to vector<16x128xf32>
      %16 = arith.addf %13, %15 : vector<16x128xf32>
      %17 = arith.truncf %16 : vector<16x128xf32> to vector<16x128xbf16>
      %c0_14 = arith.constant 0 : index
      %c0_15 = arith.constant 0 : index
      %18 = vector.load %arg6[%c0_14, %c0_15] : memref<16x128xbf16, #tpu.memory_space<vmem>>, vector<16x128xbf16>
      tpu.vector_store %arg6[%c0_14, %c0_15], %17 {strides = array<i32>} : memref<16x128xbf16, #tpu.memory_space<vmem>>, vector<16x128xbf16>,
    } else {
    }
    return
  }
  func.func @transform_0(%arg0: i32, %arg1: i32, %arg2: i32) -> (i32, i32) {
    %c0_i32 = arith.constant 0 : i32
    return %arg0, %arg2 : i32, i32
  }
  func.func @transform_1(%arg0: i32, %arg1: i32, %arg2: i32) -> (i32, i32) {
    %c0_i32 = arith.constant 0 : i32
    return %arg2, %arg1 : i32, i32
  }
  func.func @transform_2(%arg0: i32, %arg1: i32, %arg2: i32) -> (i32, i32) {
    %c0_i32 = arith.constant 0 : i32
    %c0_i32_0 = arith.constant 0 : i32
    return %c0_i32, %arg1 : i32, i32
  }
  func.func @transform_3(%arg0: i32, %arg1: i32, %arg2: i32) -> (i32, i32) {
    %c0_i32 = arith.constant 0 : i32
    return %arg0, %arg1 : i32, i32
  }
}

</mosaic_0001>

<bundles_post_ra>
// kernel: tpu_custom_call.1
= control target key start
LH: loop header
LB: loop body
LE: loop exit
PB: predicated region body
PF: predicated region fallthrough
CT: control target
= control target key end

     0   :  { %8 = vsyncpa [#allocation4], 0  ;;  %s416_s0 = inlined_call_operand.hbm [shape: f32[16,128], index: 0, kind: input, shape index: {}]   ;;  %s417_s1 = inlined_call_operand.hbm [shape: bf16[128,128], index: 1, kind: input, shape index: {}]   ;;  %s418_s2 = inlined_call_operand.vmem [shape: f32[1,128], index: 2, kind: input, shape index: {}]   ;;  %s419_s3 = inlined_call_operand.hbm [shape: bf16[16,128], index: 3, kind: output, shape index: {}]  }
   0x1   :  { %9 = vsyncpa [#allocation7], 0 }
   0x2   :  { %10 = vsyncpa [#allocation5], 0  ;;  %s342_s12 = smov [#allocation3]   ;;  %s270_s16 = scalar_lea.hbm %s416_s0, 256 }
   0x3   :  { %s16_s13 = sshll.u32 %s342_s12, 4  ;;  %p271_p0 = scmp.ne.s32.totalorder %s416_s0, %s270_s16  ;;  %s17_s13 = int_to_ptr.vmem [resolvable:$true] %s16_s13 }
   0x4   :  { %p274_p1 = scmp.lt.u32.totalorder %s270_s16, %s416_s0 }
   0x6   :  { %p276_p2 = pnand %p274_p1, %p271_p0 }
   0x8   :  { %279 = shalt.err (!%p276_p2)
}
   0x9   :  { %s280_s21 = scalar_lea.vmem %s17_s13, 256  ;;  %p285_p4 = scmp.lt.s32.totalorder %s17_s13, %s17_s13 }
   0xa   :  { %p281_p3 = scmp.ne.s32.totalorder %s17_s13, %s280_s21  ;;  %p286_p5 = scmp.lt.s32.totalorder %s280_s21, %s280_s21 }
   0xc   :  { %p287_p6 = por %p286_p5, %p285_p4 }
   0xe   :  { %p288_p7 = pnand %p287_p6, %p281_p3 }
  0x10   :  { %291 = shalt.err (!%p288_p7)
}
  0x11   :  { %s343_s22 = smov 128   ;;  %s344_s23 = smov 8  }
  0x12   :  { %22 = dma.hbm_to_vmem [thread:$0]  %s416_s0, 256, %s17_s13, [#allocation4], %s343_s22, %s343_s22, %s344_s23  }
  0x13   :  { %s345_s26 = smov [#allocation6]   ;;  %s292_s30 = scalar_lea.hbm %s417_s1, 1024 }
  0x14   :  { %s28_s27 = sshll.u32 %s345_s26, 4  ;;  %p293_p8 = scmp.ne.s32.totalorder %s417_s1, %s292_s30  ;;  %s29_s27 = int_to_ptr.vmem [resolvable:$true] %s28_s27 }
  0x15   :  { %p296_p9 = scmp.lt.u32.totalorder %s292_s30, %s417_s1 }
  0x17   :  { %p298_p10 = pnand %p296_p9, %p293_p8 }
  0x19   :  { %301 = shalt.err (!%p298_p10)
}
  0x1a   :  { %s302_s8 = scalar_lea.vmem %s29_s27, 1024  ;;  %p307_p12 = scmp.lt.s32.totalorder %s29_s27, %s29_s27 }
  0x1b   :  { %p303_p11 = scmp.ne.s32.totalorder %s29_s27, %s302_s8  ;;  %p308_p13 = scmp.lt.s32.totalorder %s302_s8, %s302_s8 }
  0x1d   :  { %p309_p0 = por %p308_p13, %p307_p12 }
  0x1f   :  { %p310_p1 = pnand %p309_p0, %p303_p11 }
  0x21   :  { %313 = shalt.err (!%p310_p1)
}
  0x22   :  { %s346_s0 = smov 64   ;;  %s347_s9 = smov 4  }
  0x23   :  { %34 = dma.hbm_to_vmem [thread:$0]  %s417_s1, 1024, %s29_s27, [#allocation7], %s346_s0, %s346_s0, %s347_s9  }
  0x24   :  { %336 = dma.done.wait [#allocation4], 256  }
  0x25   :  { %337 = vsyncadd [#allocation4], 4294967040 }
  0x26   :  { %338 = dma.done.wait [#allocation7], 1024  }
  0x27   :  { %339 = vsyncadd [#allocation7], 4294966272  ;;  %v348_v0 = vmov 0.0   ;;  %vm349_vm0 = vmmov 0   ;;  %v262_v1 = vld [vmem:[#allocation6] sm:$0xff]   ;;  %v263_v2 = vld [vmem:[#allocation6 + $0x8] sm:$0xff]  }
  0x28   :  { %233 = vmatprep.subr.bf16.mxu0 %v348_v0  ;;  %249 = vmatprep.mubr.msk.bf16.mxu0 %vm349_vm0, %v348_v0  ;;  %v264_v3 = vld [vmem:[#allocation6 + $0x10] sm:$0xff]   ;;  %v265_v4 = vld [vmem:[#allocation6 + $0x18] sm:$0xff]   ;;  %v266_v5 = vld [vmem:[#allocation6 + $0x20] sm:$0xff]   ;;  %s350_s13 = smov [#allocation8]  }
  0x29   :  { %234 = vmatpush3.bf16.msra.mxu0 %v262_v1  ;;  %v267_v6 = vld [vmem:[#allocation6 + $0x28] sm:$0xff]   ;;  %v268_v7 = vld [vmem:[#allocation6 + $0x30] sm:$0xff]   ;;  %v269_v8 = vld [vmem:[#allocation6 + $0x38] sm:$0xff]   ;;  %s193_s14 = sshll.u32 %s350_s13, 4  ;;  %s194_s14 = int_to_ptr.vmem [resolvable:$true] %s193_s14 }
  0x2a   :  { %235 = vmatprep.subr.bf16.mxu0 %v348_v0  ;;  %v52_v9 = vld [vmem:[#allocation3] sm:$0xff]  ;;  %v53_v10 = vld [vmem:[#allocation3 + $0x8] sm:$0xff]  ;;  %s314_s15 = scalar_lea.vmem %s194_s14, 128  ;;  %p319_p3 = scmp.lt.s32.totalorder %s194_s14, %s194_s14 }
  0x2b   :  { %v54_v11 = vpack.c.bf16 %v53_v10, %v52_v9  ;;  %v214_v13 = vld [vmem:[%s418_s2] ss:$0 sm:$0xff]  ;;  %p315_p2 = scmp.ne.s32.totalorder %s194_s14, %s314_s15  ;;  %p320_p4 = scmp.lt.s32.totalorder %s314_s15, %s314_s15 }
  0x2d   :  { %236 = vmatpush3.bf16.msra.mxu0 %v263_v2  ;;  %p321_p5 = por %p320_p4, %p319_p3 }
  0x2e   :  { %237 = vmatprep.subr.bf16.mxu0 %v348_v0 }
  0x2f   :  { %p322_p6 = pnand %p321_p5, %p315_p2 }
  0x31   :  { %238 = vmatpush3.bf16.msra.mxu0 %v264_v3 }
  0x32   :  { %239 = vmatprep.subr.bf16.mxu0 %v348_v0 }
  0x35   :  { %240 = vmatpush3.bf16.msra.mxu0 %v265_v4 }
  0x36   :  { %241 = vmatprep.subr.bf16.mxu0 %v348_v0 }
  0x39   :  { %242 = vmatpush3.bf16.msra.mxu0 %v266_v5 }
  0x3a   :  { %243 = vmatprep.subr.bf16.mxu0 %v348_v0 }
  0x3d   :  { %244 = vmatpush3.bf16.msra.mxu0 %v267_v6 }
  0x3e   :  { %245 = vmatprep.subr.bf16.mxu0 %v348_v0 }
  0x41   :  { %246 = vmatpush3.bf16.msra.mxu0 %v268_v7 }
  0x42   :  { %247 = vmatprep.subr.bf16.mxu0 %v348_v0 }
  0x45   :  { %248 = vmatpush3.bf16.msra.mxu0 %v269_v8 }
  0x48   :  { %250 = vmatmul.mubr.bf16.vlgmr.msra.gmra.mrb[0].mxu0 %v54_v11 }
 0x11b   :  { %v153_v12 = vpop.f32.mrb[0].mxu0 }
 0x11c   :  { %v251_v14 = vpop.f32.mrb[1].mxu0  ;;  %v176_v16 = vadd.f32 %v214_v13, %v153_v12 }
 0x11d   :  { %v156_v15 = vpop.f32.mrb[2].mxu0 }
 0x11e   :  { %v177_v17 = vadd.f32 %v214_v13, %v156_v15  ;;  %v252_v18 = vpop.f32.mrb[3].mxu0 }
 0x120   :  { %v222_v19 = vpack.c.bf16 %v177_v17, %v176_v16 }
 0x122   :  { %223 = vst [vmem:[#allocation8] sm:$0xff] %v222_v19  }
 0x123   :  { %325 = shalt.err (!%p322_p6)
}
 0x124   :  { %s326_s2 = scalar_lea.hbm %s419_s3, 128 }
 0x125   :  { %p327_p7 = scmp.ne.s32.totalorder %s419_s3, %s326_s2  ;;  %p330_p8 = scmp.lt.u32.totalorder %s326_s2, %s419_s3 }
 0x127   :  { %p332_p9 = pnand %p330_p8, %p327_p7 }
 0x129   :  { %335 = shalt.err (!%p332_p9)
}
 0x12a   :  { %199 = dma.vmem_to_hbm [thread:$0]  %s194_s14, 128, %s419_s3, [#allocation5], %s346_s0, %s346_s0, %s347_s9  }
 0x12b   :  { %340 = dma.done.wait [#allocation5], 128  }
 0x12c   :  { %341 = vsyncadd [#allocation5], 4294967168 }
 0x12d   :  { %203 = vsyncpa [#allocation4], 1 }
 0x12e   :  { %204 = vsyncpa [#allocation7], 1 }
 0x12f   :  { %205 = vsyncpa [#allocation5], 1 }

</bundles_post_ra>
